<compile_context>
chip_gen: v7x
topology: tpu7x:2x2x1
jax: 0.10.0
libtpu: 0.0.40
codegen_flags: <defaults>
</compile_context>

<pallas_src>
import functools

import numpy as np
import jax
import jax.numpy as jnp
from jax import lax
from jax.experimental import pallas as pl
from jax.experimental.pallas import tpu as pltpu

_LANES = 128


def _rtd_kernel(x_ref, z_ref, sub_ref, lane_ref, src_ref, out_ref, *, n_rows, p):
    """Fused-direction, fused-gather RTD forward (mode='minimum').

    Per entry g the wrapper pre-decoded a (sub-row, lane) position into the
    lane-dense flattened n x n matrix plus a source code:
        0 = top-left zero block of DX / DX_2  (value 0)
        1 = x_dist   (Dr1 of direction x->z)
        2 = z_dist   (Dr1 of direction z->x; also bottom-right of both DX_2)
        3 = min(x, z)  (bottom-right of DX, shared by both directions)
    Entries [0, G/2) are births (read DX), entries [G/2, G) are deaths
    (read DX_2), direction-0 entries first within each half.
    """
    x = x_ref[...]                       # (R, 128) f32  lane-dense flattened x_dist
    z = z_ref[...]                       # (R, 128) f32  lane-dense flattened z_dist
    m = jnp.minimum(x, z)                # Dr12 computed once in-kernel (no extra HBM input)

    sub = sub_ref[...]                   # (G, 1) int32  sub-row of gathered element
    lane = lane_ref[...]                 # (G, 1) int32  lane of gathered element
    src = src_ref[...]                   # (G, 1) int32  source code (see docstring)

    G = sub.shape[0]
    lane_iota = lax.broadcasted_iota(jnp.int32, (G, _LANES), 1)   # built once
    lane_hit = (lane_iota == lane) & (src != 0)                   # zero block folded into mask

    # R = ceil(n^2 / 128) is tiny here; an unrolled static row loop keeps every
    # intermediate 2D and lane-dense (no (G, R, 128) blow-up, no relayouts).
    # TODO(synk): for large n switch this to an SMEM scalar-gather fori_loop
    # (O(K) scalar loads) instead of the O(G*128) broadcast-compare per row.
    vals = jnp.zeros((G, 1), jnp.float32)
    for r in range(n_rows):
        xr = x[r:r + 1, :]                                            # (1, 128)
        zr = z[r:r + 1, :]
        mr = m[r:r + 1, :]
        sel = jnp.where(src == 1, xr, jnp.where(src == 2, zr, mr))    # (G, 128)
        hit = lane_hit & (sub == r)                                   # (G, 128)
        vals = vals + jnp.sum(jnp.where(hit, sel, 0.0), axis=1, keepdims=True)

    half = G // 2
    birth = vals[:half, :]               # gathered from DX
    death = vals[half:, :]               # gathered from DX_2
    diff = jnp.abs(death - birth)
    if p == 1.0:
        pass
    elif p == 2.0:
        diff = diff * diff
    else:
        # NOTE: generic pow lowers to exp(p*log|.|); fine for the forward pass,
        # would need a guard at diff==0 before adding a custom VJP.
        diff = diff ** p

    total = jnp.sum(diff, keepdims=True)                     # (1, 1): loss_xz + loss_zx
    out_ref[...] = jnp.broadcast_to(total, out_ref.shape)    # one unmasked (8, 128) store


def _decode_direction(ids, *, dim, card, n, dr1_src):
    """Decode raw (dim, 4*card) RTD indices of one direction into flat/source codes.

    For the 2n x 2n block matrices (mode='minimum')
        DX   = [[0, Dr1.T], [Dr1, min(Dr1, Dr2)]]     (birth lookups,  even rows of ids)
        DX_2 = [[0, Dr1.T], [Dr1, z]]                 (death lookups,  odd  rows of ids)
    every (row, col) pair becomes a flat element index into the relevant n x n
    source matrix plus a source code (0 zero-block, 1 x, 2 z, 3 min(x, z)).
    `dr1_src` is 1 for direction x->z (Dr1 = x) and 2 for z->x (Dr1 = z).
    """
    K = dim * card
    ids = jnp.asarray(ids, jnp.int32).reshape(dim, 2 * card, 2)
    rb = ids[:, 0::2, 0].reshape(K)
    cb = ids[:, 0::2, 1].reshape(K)
    rd = ids[:, 1::2, 0].reshape(K)
    cd = ids[:, 1::2, 1].reshape(K)

    def decode(r, c, bottom_right_src):
        r_lt = r < n
        c_lt = c < n
        rr = jnp.where(r_lt, r, r - n)
        cc = jnp.where(c_lt, c, c - n)
        # top-right block reads Dr1[c-n, r]; bottom-left / bottom-right read M[r', c'].
        flat = jnp.where(r_lt & ~c_lt, cc * n + rr, rr * n + cc)
        src = jnp.where(r_lt & c_lt, 0,
                        jnp.where(~r_lt & ~c_lt, bottom_right_src, dr1_src))
        flat = jnp.where(src == 0, 0, flat)     # keep zero-block indices in range
        return flat, src

    birth = decode(rb, cb, 3)   # births read DX;   bottom-right = min(x, z)
    death = decode(rd, cd, 2)   # deaths read DX_2; bottom-right = z for both directions
    return birth, death


def rtd_loss(x_dist, z_dist, ids_xz, ids_zx=None, *, dim=1, card=16, lp=1.0,
             is_sym=True, mode='minimum'):
    """Pallas equivalent of RTDLoss.forward (mode='minimum'), fully jittable."""
    assert mode == 'minimum'
    n = x_dist.shape[0]
    n2 = n * n
    n_rows = -(-n2 // _LANES)           # ceil(n^2 / 128)
    pad = n_rows * _LANES - n2

    def lane_dense(d):
        f = jnp.reshape(d.astype(jnp.float32), (n2,))
        if pad:
            f = jnp.pad(f, (0, pad))
        return jnp.reshape(f, (n_rows, _LANES))

    x2d = lane_dense(x_dist)
    z2d = lane_dense(z_dist)

    (bf0, bs0), (df0, ds0) = _decode_direction(ids_xz, dim=dim, card=card, n=n, dr1_src=1)
    if is_sym:
        (bf1, bs1), (df1, ds1) = _decode_direction(ids_zx, dim=dim, card=card, n=n, dr1_src=2)
        flats = jnp.concatenate([bf0, bf1, df0, df1])   # births first, then deaths
        srcs = jnp.concatenate([bs0, bs1, ds0, ds1])
    else:
        flats = jnp.concatenate([bf0, df0])
        srcs = jnp.concatenate([bs0, ds0])

    sub_ids = (flats // _LANES).astype(jnp.int32)[:, None]    # (G, 1)
    lane_ids = (flats % _LANES).astype(jnp.int32)[:, None]    # (G, 1)
    src_ids = srcs.astype(jnp.int32)[:, None]                 # (G, 1)

    kernel = functools.partial(_rtd_kernel, n_rows=n_rows, p=lp)
    out = pl.pallas_call(
        kernel,
        out_shape=jax.ShapeDtypeStruct((8, _LANES), jnp.float32),
        in_specs=[pl.BlockSpec(memory_space=pltpu.MemorySpace.VMEM)] * 5,
        out_specs=pl.BlockSpec(memory_space=pltpu.MemorySpace.VMEM),
    )(x2d, z2d, sub_ids, lane_ids, src_ids)

    # PyTorch's RTDLoss divides by 2 unconditionally (loss_zx stays 0.0 when
    # is_sym=False), so the halving here is applied in both cases to match it.
    return out[0, 0] / 2.0


def _reference_loss(x_dist, z_dist, ids_xz, ids_zx, *, dim, card, p, is_sym=True):
    """Plain-numpy reference mirroring the PyTorch forward (given the indices)."""
    def direction(dr1, dr2, dbr2, ids):
        n = dr1.shape[0]
        zz = np.zeros((n, n), np.float64)
        DX = np.block([[zz, dr1.T], [dr1, np.minimum(dr1, dr2)]])
        DX2 = np.block([[zz, dr1.T], [dr1, dbr2]])
        total = 0.0
        for d in range(dim):
            tmp = np.reshape(np.asarray(ids[d]), (2 * card, 2))
            birth = DX[tmp[0::2, 0], tmp[0::2, 1]]
            death = DX2[tmp[1::2, 0], tmp[1::2, 1]]
            total += np.sum(np.abs(death - birth) ** p)
        return total

    lxz = direction(x_dist, z_dist, z_dist, ids_xz)
    lzx = direction(z_dist, x_dist, z_dist, ids_zx) if is_sym else 0.0
    return (lxz + lzx) / 2.0


if __name__ == "__main__":
    # Small, deterministic example: n=16 points, two embeddings of dims 8 / 32.
    n, d_x, d_z = 16, 8, 32
    dim, card, lp = 1, 16, 1.0

    key = jax.random.PRNGKey(0)
    kx, kz = jax.random.split(key)
    x = jax.random.normal(kx, (n, d_x), dtype=jnp.float32)
    z = jax.random.normal(kz, (n, d_z), dtype=jnp.float32)

    def pdist(a):
        sq = jnp.sum(a * a, axis=1, keepdims=True)
        d2 = sq + sq.T - 2.0 * (a @ a.T)
        return jnp.sqrt(jnp.maximum(d2, 0.0))

    x_dist = pdist(x)  # (16, 16)
    z_dist = pdist(z)  # (16, 16)

    # TODO(synk): Rips/get_indicies (ripser persistent-homology pair extraction)
    # is a host-side combinatorial algorithm with no Pallas equivalent; we use
    # deterministic synthetic index lists of the same shape (dim, 4*card).
    rng = np.random.default_rng(0)
    ids_xz = jnp.asarray(rng.integers(0, 2 * n, size=(dim, 4 * card)), jnp.int32)
    ids_zx = jnp.asarray(rng.integers(0, 2 * n, size=(dim, 4 * card)), jnp.int32)

    loss_fn = jax.jit(functools.partial(rtd_loss, dim=dim, card=card, lp=lp,
                                        is_sym=True, mode='minimum'))
    loss = jax.block_until_ready(loss_fn(x_dist, z_dist, ids_xz, ids_zx))

    ref = _reference_loss(np.asarray(x_dist, np.float64), np.asarray(z_dist, np.float64),
                          np.asarray(ids_xz), np.asarray(ids_zx),
                          dim=dim, card=card, p=lp, is_sym=True)
    np.testing.assert_allclose(float(loss), ref, rtol=1e-4, atol=1e-4)

    print("KERNEL_OK")
</pallas_src>

<mosaic_0001>
module attributes {stable_mosaic.version = 11 : i64} {
  func.func @_rtd_kernel(%arg0: memref<2x128xf32, #tpu.memory_space<vmem>>, %arg1: memref<2x128xf32, #tpu.memory_space<vmem>>, %arg2: memref<64x1xi32, #tpu.memory_space<vmem>>, %arg3: memref<64x1xi32, #tpu.memory_space<vmem>>, %arg4: memref<64x1xi32, #tpu.memory_space<vmem>>, %arg5: memref<8x128xf32, #tpu.memory_space<vmem>>) attributes {dimension_semantics = [], scalar_prefetch = 0 : i64, scratch_operands = 0 : i64, tpu.core_type = #tpu.core_type<tc>} {
    %c0 = arith.constant 0 : index
    %c0_0 = arith.constant 0 : index
    %0 = vector.load %arg0[%c0, %c0_0] : memref<2x128xf32, #tpu.memory_space<vmem>>, vector<2x128xf32>
    %c0_1 = arith.constant 0 : index
    %c0_2 = arith.constant 0 : index
    %1 = vector.load %arg1[%c0_1, %c0_2] : memref<2x128xf32, #tpu.memory_space<vmem>>, vector<2x128xf32>
    %2 = arith.minimumf %0, %1 : vector<2x128xf32>
    %c0_3 = arith.constant 0 : index
    %c0_4 = arith.constant 0 : index
    %3 = vector.load %arg2[%c0_3, %c0_4] : memref<64x1xi32, #tpu.memory_space<vmem>>, vector<64x1xi32>
    %c0_5 = arith.constant 0 : index
    %c0_6 = arith.constant 0 : index
    %4 = vector.load %arg3[%c0_5, %c0_6] : memref<64x1xi32, #tpu.memory_space<vmem>>, vector<64x1xi32>
    %c0_7 = arith.constant 0 : index
    %c0_8 = arith.constant 0 : index
    %5 = vector.load %arg4[%c0_7, %c0_8] : memref<64x1xi32, #tpu.memory_space<vmem>>, vector<64x1xi32>
    %6 = tpu.iota {dimensions = array<i32: 1>} : vector<64x128xi32>
    %7 = vector.broadcast %4 : vector<64x1xi32> to vector<64x128xi32>
    %8 = arith.cmpi eq, %6, %7 : vector<64x128xi32>
    %c0_i32 = arith.constant 0 : i32
    %9 = vector.broadcast %c0_i32 : i32 to vector<64x1xi32>
    %10 = arith.cmpi ne, %5, %9 : vector<64x1xi32>
    %11 = vector.broadcast %10 : vector<64x1xi1> to vector<64x128xi1>
    %12 = arith.andi %8, %11 : vector<64x128xi1>
    %cst = arith.constant 0.000000e+00 : f32
    %13 = vector.broadcast %cst : f32 to vector<64x1xf32>
    %14 = vector.extract_strided_slice %0 {offsets = [0, 0], sizes = [1, 128], strides = [1, 1]} : vector<2x128xf32> to vector<1x128xf32>
    %15 = vector.extract_strided_slice %1 {offsets = [0, 0], sizes = [1, 128], strides = [1, 1]} : vector<2x128xf32> to vector<1x128xf32>
    %16 = vector.extract_strided_slice %2 {offsets = [0, 0], sizes = [1, 128], strides = [1, 1]} : vector<2x128xf32> to vector<1x128xf32>
    %c1_i32 = arith.constant 1 : i32
    %17 = vector.broadcast %c1_i32 : i32 to vector<64x1xi32>
    %18 = arith.cmpi eq, %5, %17 : vector<64x1xi32>
    %c2_i32 = arith.constant 2 : i32
    %19 = vector.broadcast %c2_i32 : i32 to vector<64x1xi32>
    %20 = arith.cmpi eq, %5, %19 : vector<64x1xi32>
    %21 = vector.shape_cast %20 : vector<64x1xi1> to vector<64x1xi1>
    %22 = vector.broadcast %21 : vector<64x1xi1> to vector<64x128xi1>
    %23 = vector.shape_cast %15 : vector<1x128xf32> to vector<1x128xf32>
    %24 = vector.broadcast %23 : vector<1x128xf32> to vector<64x128xf32>
    %25 = vector.shape_cast %16 : vector<1x128xf32> to vector<1x128xf32>
    %26 = vector.broadcast %25 : vector<1x128xf32> to vector<64x128xf32>
    %27 = arith.select %22, %24, %26 : vector<64x128xi1>, vector<64x128xf32>
    %28 = vector.shape_cast %18 : vector<64x1xi1> to vector<64x1xi1>
    %29 = vector.broadcast %28 : vector<64x1xi1> to vector<64x128xi1>
    %30 = vector.shape_cast %14 : vector<1x128xf32> to vector<1x128xf32>
    %31 = vector.broadcast %30 : vector<1x128xf32> to vector<64x128xf32>
    %32 = arith.select %29, %31, %27 : vector<64x128xi1>, vector<64x128xf32>
    %c0_i32_9 = arith.constant 0 : i32
    %33 = vector.broadcast %c0_i32_9 : i32 to vector<64x1xi32>
    %34 = arith.cmpi eq, %3, %33 : vector<64x1xi32>
    %35 = vector.broadcast %34 : vector<64x1xi1> to vector<64x128xi1>
    %36 = arith.andi %12, %35 : vector<64x128xi1>
    %cst_10 = arith.constant 0.000000e+00 : f32
    %37 = vector.broadcast %cst_10 : f32 to vector<64x128xf32>
    %38 = arith.select %36, %32, %37 : vector<64x128xi1>, vector<64x128xf32>
    %cst_11 = arith.constant dense<0.000000e+00> : vector<64xf32>
    %39 = vector.multi_reduction <add>, %38, %cst_11 [1] : vector<64x128xf32> to vector<64xf32>
    %40 = vector.shape_cast %39 : vector<64xf32> to vector<64x1xf32>
    %41 = arith.addf %13, %40 : vector<64x1xf32>
    %42 = vector.extract_strided_slice %0 {offsets = [1, 0], sizes = [1, 128], strides = [1, 1]} : vector<2x128xf32> to vector<1x128xf32>
    %43 = vector.extract_strided_slice %1 {offsets = [1, 0], sizes = [1, 128], strides = [1, 1]} : vector<2x128xf32> to vector<1x128xf32>
    %44 = vector.extract_strided_slice %2 {offsets = [1, 0], sizes = [1, 128], strides = [1, 1]} : vector<2x128xf32> to vector<1x128xf32>
    %c1_i32_12 = arith.constant 1 : i32
    %45 = vector.broadcast %c1_i32_12 : i32 to vector<64x1xi32>
    %46 = arith.cmpi eq, %5, %45 : vector<64x1xi32>
    %c2_i32_13 = arith.constant 2 : i32
    %47 = vector.broadcast %c2_i32_13 : i32 to vector<64x1xi32>
    %48 = arith.cmpi eq, %5, %47 : vector<64x1xi32>
    %49 = vector.shape_cast %48 : vector<64x1xi1> to vector<64x1xi1>
    %50 = vector.broadcast %49 : vector<64x1xi1> to vector<64x128xi1>
    %51 = vector.shape_cast %43 : vector<1x128xf32> to vector<1x128xf32>
    %52 = vector.broadcast %51 : vector<1x128xf32> to vector<64x128xf32>
    %53 = vector.shape_cast %44 : vector<1x128xf32> to vector<1x128xf32>
    %54 = vector.broadcast %53 : vector<1x128xf32> to vector<64x128xf32>
    %55 = arith.select %50, %52, %54 : vector<64x128xi1>, vector<64x128xf32>
    %56 = vector.shape_cast %46 : vector<64x1xi1> to vector<64x1xi1>
    %57 = vector.broadcast %56 : vector<64x1xi1> to vector<64x128xi1>
    %58 = vector.shape_cast %42 : vector<1x128xf32> to vector<1x128xf32>
    %59 = vector.broadcast %58 : vector<1x128xf32> to vector<64x128xf32>
    %60 = arith.select %57, %59, %55 : vector<64x128xi1>, vector<64x128xf32>
    %c1_i32_14 = arith.constant 1 : i32
    %61 = vector.broadcast %c1_i32_14 : i32 to vector<64x1xi32>
    %62 = arith.cmpi eq, %3, %61 : vector<64x1xi32>
    %63 = vector.broadcast %62 : vector<64x1xi1> to vector<64x128xi1>
    %64 = arith.andi %12, %63 : vector<64x128xi1>
    %cst_15 = arith.constant 0.000000e+00 : f32
    %65 = vector.broadcast %cst_15 : f32 to vector<64x128xf32>
    %66 = arith.select %64, %60, %65 : vector<64x128xi1>, vector<64x128xf32>
    %cst_16 = arith.constant dense<0.000000e+00> : vector<64xf32>
    %67 = vector.multi_reduction <add>, %66, %cst_16 [1] : vector<64x128xf32> to vector<64xf32>
    %68 = vector.shape_cast %67 : vector<64xf32> to vector<64x1xf32>
    %69 = arith.addf %41, %68 : vector<64x1xf32>
    %70 = vector.extract_strided_slice %69 {offsets = [0, 0], sizes = [32, 1], strides = [1, 1]} : vector<64x1xf32> to vector<32x1xf32>
    %71 = vector.extract_strided_slice %69 {offsets = [32, 0], sizes = [32, 1], strides = [1, 1]} : vector<64x1xf32> to vector<32x1xf32>
    %72 = arith.subf %71, %70 : vector<32x1xf32>
    %73 = math.absf %72 : vector<32x1xf32>
    %74 = vector.shape_cast %73 : vector<32x1xf32> to vector<1x32x1xf32>
    %cst_17 = arith.constant dense<0.000000e+00> : vector<1xf32>
    %75 = vector.multi_reduction <add>, %74, %cst_17 [1, 2] : vector<1x32x1xf32> to vector<1xf32>
    %76 = vector.shape_cast %75 : vector<1xf32> to vector<1x1x1xf32>
    %77 = vector.extract %76[0, 0, 0] : f32 from vector<1x1x1xf32>
    %78 = vector.broadcast %77 : f32 to vector<1x1xf32>
    %79 = vector.shape_cast %78 : vector<1x1xf32> to vector<1x1xf32>
    %80 = vector.broadcast %79 : vector<1x1xf32> to vector<8x128xf32>
    %c0_18 = arith.constant 0 : index
    %c0_19 = arith.constant 0 : index
    %81 = vector.load %arg5[%c0_18, %c0_19] : memref<8x128xf32, #tpu.memory_space<vmem>>, vector<8x128xf32>
    tpu.vector_store %arg5[%c0_18, %c0_19], %80 {strides = array<i32>} : memref<8x128xf32, #tpu.memory_space<vmem>>, vector<8x128xf32>,
    return
  }
}

</mosaic_0001>

<bundles_post_ra>
// kernel: rtd_loss.1
= control target key start
LH: loop header
LB: loop body
LE: loop exit
PB: predicated region body
PF: predicated region fallthrough
CT: control target
= control target key end

     0   :  { %v501_v0 = vmov 0   ;;  %s886_s3 = inlined_call_operand.vmem [shape: s32[64,1], index: 3, kind: input, shape index: {}]   ;;  %s887_s4 = inlined_call_operand.vmem [shape: s32[64,1], index: 4, kind: input, shape index: {}]   ;;  %s888_s2 = inlined_call_operand.vmem [shape: s32[64,1], index: 2, kind: input, shape index: {}]   ;;  %s889_s0 = inlined_call_operand.vmem [shape: f32[2,128], index: 0, kind: input, shape index: {}]   ;;  %s890_s1 = inlined_call_operand.vmem [shape: f32[2,128], index: 1, kind: input, shape index: {}]   ;;  %s891_s5 = inlined_call_operand.vmem [shape: f32[8,128], index: 5, kind: output, shape index: {}]  }
   0x1   :  { %500 = vset.pattern.permute.xlu1 %v501_v0  ;;  %499 = vset.pattern.permute.xlu0 %v501_v0  ;;  %v35_v1 = vld [vmem:[%s886_s3 + $0x20] sm:$0xff]  ;;  %v40_v3 = vld [vmem:[%s887_s4 + $0x8] sm:$0xff]  ;;  %v46_v15 = vld [vmem:[%s887_s4 + $0x38] sm:$0xff] }
   0x2   :  { %v31_v2 = vld [vmem:[%s886_s3] sm:$0xff]  ;;  %62 = vperm.xlu1 %500, %v35_v1   ;;  %v36_v5 = vld [vmem:[%s886_s3 + $0x28] sm:$0xff]  ;;  %vm82_vm0 = vcmp.ne.s32.totalorder %v40_v3, 0  ;;  %vm146_vm4 = vcmp.eq.s32.totalorder %v40_v3, 2  ;;  %v42_v16 = vld [vmem:[%s887_s4 + $0x18] sm:$0xff]  ;;  %vm88_vm8 = vcmp.ne.s32.totalorder %v46_v15, 0 }
   0x3   :  { %50 = vperm.xlu0 %499, %v31_v2   ;;  %v39_v4 = vld [vmem:[%s887_s4] sm:$0xff]  ;;  %v32_v6 = vld [vmem:[%s886_s3 + $0x8] sm:$0xff]  ;;  %v90_v9 = vsel %vm82_vm0, 1, %v501_v0  ;;  %v154_v13 = vsel %vm146_vm4, 1, %v501_v0  ;;  %vm84_vm9 = vcmp.ne.s32.totalorder %v42_v16, 0  ;;  %vm152_vm10 = vcmp.eq.s32.totalorder %v46_v15, 2 }
   0x4   :  { %vm81_vm1 = vcmp.ne.s32.totalorder %v39_v4, 0  ;;  %v44_v7 = vld [vmem:[%s887_s4 + $0x28] sm:$0xff]  ;;  %v43_v8 = vld [vmem:[%s887_s4 + $0x20] sm:$0xff]  ;;  %vm145_vm5 = vcmp.eq.s32.totalorder %v39_v4, 2  ;;  %vm148_vm11 = vcmp.eq.s32.totalorder %v42_v16, 2  ;;  %v573_v19 = vsel %vm88_vm8, 1, %v501_v0 }
   0x5   :  { %v89_v10 = vsel %vm81_vm1, 1, %v501_v0  ;;  %vm86_vm2 = vcmp.ne.s32.totalorder %v44_v7, 0  ;;  %vm85_vm3 = vcmp.ne.s32.totalorder %v43_v8, 0  ;;  %vm150_vm6 = vcmp.eq.s32.totalorder %v44_v7, 2  ;;  %v24_v27 = vld [vmem:[%s888_s2 + $0x8] sm:$0xff]  ;;  %v23_v28 = vld [vmem:[%s888_s2] sm:$0xff] }
   0x6   :  { %65 = vperm.xlu1 %500, %v36_v5   ;;  %v94_v11 = vsel %vm86_vm2, 1, %v501_v0  ;;  %v93_v12 = vsel %vm85_vm3, 1, %v501_v0  ;;  %vm149_vm7 = vcmp.eq.s32.totalorder %v43_v8, 2  ;;  %v153_v14 = vsel %vm145_vm5, 1, %v501_v0  ;;  %v28_v31 = vld [vmem:[%s888_s2 + $0x28] sm:$0xff]  ;;  %v27_v32 = vld [vmem:[%s888_s2 + $0x20] sm:$0xff] }
   0x7   :  { %53 = vperm.xlu0 %499, %v32_v6   ;;  %v158_v17 = vsel %vm150_vm6, 1, %v501_v0  ;;  %v157_v18 = vsel %vm149_vm7, 1, %v501_v0  ;;  %v576_v20 = vsel %vm84_vm9, 1, %v501_v0  ;;  %v579_v21 = vsel %vm152_vm10, 1, %v501_v0  ;;  %v45_v41 = vld [vmem:[%s887_s4 + $0x30] sm:$0xff]  ;;  %v38_v57 = vld [vmem:[%s886_s3 + $0x38] sm:$0xff] }
   0x8   :  { %v582_v22 = vsel %vm148_vm11, 1, %v501_v0  ;;  %vm138_vm12 = vcmp.eq.s32.totalorder %v40_v3, 1  ;;  %vm137_vm13 = vcmp.eq.s32.totalorder %v39_v4, 1  ;;  %vm144_vm14 = vcmp.eq.s32.totalorder %v46_v15, 1  ;;  %v41_v42 = vld [vmem:[%s887_s4 + $0x10] sm:$0xff]  ;;  %v34_v58 = vld [vmem:[%s886_s3 + $0x18] sm:$0xff] }
   0x9   :  { %vm140_vm15 = vcmp.eq.s32.totalorder %v42_v16, 1  ;;  %v585_v23 = vsel %vm144_vm14, 1, %v501_v0  ;;  %v210_v25 = vsel %vm138_vm12, 1, %v501_v0  ;;  %v209_v26 = vsel %vm137_vm13, 1, %v501_v0  ;;  %v37_v43 = vld [vmem:[%s886_s3 + $0x30] sm:$0xff]  ;;  %v30_v59 = vld [vmem:[%s888_s2 + $0x38] sm:$0xff] }
   0xa   :  { %101 = vperm.xlu1 %500, %v90_v9   ;;  %v588_v24 = vsel %vm140_vm15, 1, %v501_v0  ;;  %vm142_vm0 = vcmp.eq.s32.totalorder %v44_v7, 1  ;;  %vm141_vm1 = vcmp.eq.s32.totalorder %v43_v8, 1  ;;  %vm262_vm2 = vcmp.eq.s32.totalorder %v24_v27, 0  ;;  %v33_v44 = vld [vmem:[%s886_s3 + $0x10] sm:$0xff]  ;;  %v26_v60 = vld [vmem:[%s888_s2 + $0x18] sm:$0xff] }
   0xb   :  { %98 = vperm.xlu0 %499, %v89_v10   ;;  %v214_v29 = vsel %vm142_vm0, 1, %v501_v0  ;;  %v213_v30 = vsel %vm141_vm1, 1, %v501_v0  ;;  %vm261_vm3 = vcmp.eq.s32.totalorder %v23_v28, 0  ;;  %v270_v33 = vsel %vm262_vm2, 1, %v501_v0  ;;  %v29_v49 = vld [vmem:[%s888_s2 + $0x30] sm:$0xff] }
   0xc   :  { %v269_v34 = vsel %vm261_vm3, 1, %v501_v0  ;;  %vm266_vm4 = vcmp.eq.s32.totalorder %v28_v31, 0  ;;  %vm265_vm5 = vcmp.eq.s32.totalorder %v27_v32, 0  ;;  %vm378_vm6 = vcmp.eq.s32.totalorder %v24_v27, 1  ;;  %v25_v50 = vld [vmem:[%s888_s2 + $0x10] sm:$0xff] }
   0xd   :  { %v274_v35 = vsel %vm266_vm4, 1, %v501_v0  ;;  %v273_v36 = vsel %vm265_vm5, 1, %v501_v0  ;;  %vm377_vm7 = vcmp.eq.s32.totalorder %v23_v28, 1  ;;  %v386_v37 = vsel %vm378_vm6, 1, %v501_v0  ;;  %v20_v15 = vld [vmem:[%s889_s0] sm:$0x3] }
   0xe   :  { %113 = vperm.xlu1 %500, %v94_v11   ;;  %v385_v38 = vsel %vm377_vm7, 1, %v501_v0  ;;  %vm382_vm8 = vcmp.eq.s32.totalorder %v28_v31, 1  ;;  %vm381_vm9 = vcmp.eq.s32.totalorder %v27_v32, 1  ;;  %vm87_vm10 = vcmp.ne.s32.totalorder %v45_v41, 0  ;;  %v21_v16 = vld [vmem:[%s890_s1] sm:$0x3] }
   0xf   :  { %110 = vperm.xlu0 %499, %v93_v12   ;;  %v390_v39 = vsel %vm382_vm8, 1, %v501_v0  ;;  %v389_v40 = vsel %vm381_vm9, 1, %v501_v0  ;;  %vm83_vm11 = vcmp.ne.s32.totalorder %v41_v42, 0  ;;  %v95_v45 = vsel %vm87_vm10, 1, %v501_v0 }
  0x10   :  { %v91_v46 = vsel %vm83_vm11, 1, %v501_v0  ;;  %vm151_vm12 = vcmp.eq.s32.totalorder %v45_v41, 2  ;;  %vm147_vm13 = vcmp.eq.s32.totalorder %v41_v42, 2  ;;  %vm143_vm14 = vcmp.eq.s32.totalorder %v45_v41, 1 }
  0x11   :  { %v159_v47 = vsel %vm151_vm12, 1, %v501_v0  ;;  %v155_v48 = vsel %vm147_vm13, 1, %v501_v0  ;;  %vm139_vm15 = vcmp.eq.s32.totalorder %v41_v42, 1  ;;  %v215_v51 = vsel %vm143_vm14, 1, %v501_v0 }
  0x12   :  { %165 = vperm.xlu1 %500, %v154_v13   ;;  %v211_v52 = vsel %vm139_vm15, 1, %v501_v0  ;;  %vm267_vm0 = vcmp.eq.s32.totalorder %v29_v49, 0  ;;  %vm263_vm1 = vcmp.eq.s32.totalorder %v25_v50, 0  ;;  %vm383_vm2 = vcmp.eq.s32.totalorder %v29_v49, 1 }
  0x13   :  { %162 = vperm.xlu0 %499, %v153_v14   ;;  %v275_v53 = vsel %vm267_vm0, 1, %v501_v0  ;;  %v271_v54 = vsel %vm263_vm1, 1, %v501_v0  ;;  %vm379_vm3 = vcmp.eq.s32.totalorder %v25_v50, 1  ;;  %v391_v55 = vsel %vm383_vm2, 1, %v501_v0 }
  0x14   :  { %v387_v56 = vsel %vm379_vm3, 1, %v501_v0  ;;  %vm268_vm4 = vcmp.eq.s32.totalorder %v30_v59, 0  ;;  %vm264_vm5 = vcmp.eq.s32.totalorder %v26_v60, 0  ;;  %vm384_vm6 = vcmp.eq.s32.totalorder %v30_v59, 1 }
  0x15   :  { %v276_v61 = vsel %vm268_vm4, 1, %v501_v0  ;;  %v272_v62 = vsel %vm264_vm5, 1, %v501_v0  ;;  %vm380_vm7 = vcmp.eq.s32.totalorder %v26_v60, 1  ;;  %v392_v63 = vsel %vm384_vm6, 1, %v501_v0 }
  0x16   :  { %177 = vperm.xlu1 %500, %v158_v17   ;;  %v388_v1 = vsel %vm380_vm7, 1, %v501_v0  ;;  %v47_v12 = vlaneseq }
  0x17   :  { %174 = vperm.xlu0 %499, %v157_v18  }
  0x18   :  { %v194_v14 = vshrl.u32 %v47_v12, 7 }
  0x1a   :  { %221 = vperm.xlu1 %500, %v210_v25   ;;  %v351_v27 = vsub.s32 1, %v194_v14 }
  0x1b   :  { %218 = vperm.xlu0 %499, %v209_v26  }
  0x1e   :  { %233 = vperm.xlu1 %500, %v214_v29  }
  0x1f   :  { %230 = vperm.xlu0 %499, %v213_v30  }
  0x22   :  { %281 = vperm.xlu1 %500, %v270_v33  }
  0x23   :  { %278 = vperm.xlu0 %499, %v269_v34  }
  0x26   :  { %293 = vperm.xlu1 %500, %v274_v35  }
  0x27   :  { %290 = vperm.xlu0 %499, %v273_v36  }
  0x2a   :  { %397 = vperm.xlu1 %500, %v386_v37   ;;  %v733_v37 = vrot.slane %v21_v16, %v351_v27 }
  0x2b   :  { %394 = vperm.xlu0 %499, %v385_v38  }
  0x2e   :  { %409 = vperm.xlu1 %500, %v390_v39  }
  0x2f   :  { %406 = vperm.xlu0 %499, %v389_v40  }
  0x32   :  { %68 = vperm.xlu1 %500, %v37_v43  }
  0x33   :  { %56 = vperm.xlu0 %499, %v33_v44  }
  0x36   :  { %116 = vperm.xlu1 %500, %v95_v45   ;;  %v752_v45 = vrot.slane %v20_v15, %v351_v27 }
  0x37   :  { %104 = vperm.xlu0 %499, %v91_v46  }
  0x3a   :  { %180 = vperm.xlu1 %500, %v159_v47  }
  0x3b   :  { %168 = vperm.xlu0 %499, %v155_v48  }
  0x3e   :  { %236 = vperm.xlu1 %500, %v215_v51  }
  0x3f   :  { %224 = vperm.xlu0 %499, %v211_v52  }
  0x42   :  { %296 = vperm.xlu1 %500, %v275_v53  }
  0x43   :  { %284 = vperm.xlu0 %499, %v271_v54  }
  0x46   :  { %412 = vperm.xlu1 %500, %v391_v55  }
  0x47   :  { %400 = vperm.xlu0 %499, %v387_v56  }
  0x4a   :  { %71 = vperm.xlu1 %500, %v38_v57  }
  0x4b   :  { %59 = vperm.xlu0 %499, %v34_v58  }
  0x4e   :  { %119 = vperm.xlu1 %500, %v573_v19   ;;  %v195_v19 = vsub.s32 0, %v194_v14 }
  0x4f   :  { %107 = vperm.xlu0 %499, %v576_v20   ;;  %v22_v20 = vmin.f32 %v20_v15, %v21_v16 }
  0x50   :  { %v697_v26 = vrot.slane %v20_v15, %v195_v19 }
  0x51   :  { %v694_v25 = vrot.slane %v22_v20, %v195_v19  ;;  %v741_v42 = vrot.slane %v22_v20, %v351_v27 }
  0x52   :  { %183 = vperm.xlu1 %500, %v579_v21   ;;  %v686_v21 = vand.u32 127, %v47_v12 }
  0x53   :  { %171 = vperm.xlu0 %499, %v582_v22  }
  0x56   :  { %239 = vperm.xlu1 %500, %v585_v23  }
  0x57   :  { %227 = vperm.xlu0 %499, %v588_v24   ;;  %v692_v24 = vrot.slane %v21_v16, %v195_v19 }
  0x5a   :  { %299 = vperm.xlu1 %500, %v276_v61  }
  0x5b   :  { %287 = vperm.xlu0 %499, %v272_v62  }
  0x5e   :  { %415 = vperm.xlu1 %500, %v392_v63  }
  0x5f   :  { %403 = vperm.xlu0 %499, %v388_v1  }
  0x81   :  { %v63_v2 = vpop.permute.xlu1 %62 }
  0x82   :  { %v51_v3 = vpop.permute.xlu0 %50 }
  0x83   :  { %vm73_vm14 = vcmp.eq.s32.totalorder %v686_v21, %v51_v3 }
  0x85   :  { %v664_v4 = vpop.permute.xlu1 %65 }
  0x86   :  { %v54_v5 = vpop.permute.xlu0 %53 }
  0x87   :  { %vm74_vm11 = vcmp.eq.s32.totalorder %v686_v21, %v54_v5 }
  0x89   :  { %v102_v6 = vpop.permute.xlu1 %101 }
  0x8a   :  { %v99_v7 = vpop.permute.xlu0 %98  ;;  %vm122_vm8 = vcmp.eq.s32.totalorder %v102_v6, 1 }
  0x8b   :  { %vm121_vm9 = vcmp.eq.s32.totalorder %v99_v7, 1  ;;  %vm703_vm15 = vmand %vm74_vm11, %vm122_vm8 }
  0x8c   :  { %vm708_vm1 = vmand %vm73_vm14, %vm121_vm9  ;;  %vm77_vm9 = vcmp.eq.s32.totalorder %v686_v21, %v63_v2 }
  0x8d   :  { %v666_v8 = vpop.permute.xlu1 %113 }
  0x8e   :  { %v111_v9 = vpop.permute.xlu0 %110  ;;  %vm126_vm11 = vcmp.eq.s32.totalorder %v666_v8, 1 }
  0x8f   :  { %vm125_vm4 = vcmp.eq.s32.totalorder %v111_v9, 1 }
  0x90   :  { %vm737_vm14 = vmand %vm77_vm9, %vm125_vm4 }
  0x91   :  { %v668_v10 = vpop.permute.xlu1 %165 }
  0x92   :  { %v670_v11 = vpop.permute.xlu0 %162  ;;  %vm186_vm10 = vcmp.eq.s32.totalorder %v668_v10, 1 }
  0x93   :  { %vm185_vm12 = vcmp.eq.s32.totalorder %v670_v11, 1  ;;  %v202_v32 = vsel %vm186_vm10, %v692_v24, %v694_v25  ;;  %v358_v59 = vsel %vm186_vm10, %v733_v37, %v741_v42 }
  0x94   :  { %v201_v33 = vsel %vm185_vm12, %v692_v24, %v694_v25  ;;  %v357_v50 = vsel %vm185_vm12, %v733_v37, %v741_v42 }
  0x95   :  { %v672_v13 = vpop.permute.xlu1 %177 }
  0x96   :  { %v674_v0 = vpop.permute.xlu0 %174 }
  0x97   :  { %vm189_vm5 = vcmp.eq.s32.totalorder %v674_v0, 1 }
  0x98   :  { %v205_v43 = vsel %vm189_vm5, %v692_v24, %v694_v25  ;;  %v361_v58 = vsel %vm189_vm5, %v733_v37, %v741_v42 }
  0x99   :  { %v682_v17 = vpop.permute.xlu1 %221 }
  0x9a   :  { %v684_v18 = vpop.permute.xlu0 %218  ;;  %vm892_vm13 = vcmp.eq.s32.totalorder %v682_v17, 1  ;;  %vm903_vm5 = vcmp.eq.s32.totalorder %v682_v17, 1 }
  0x9b   :  { %vm241_vm0 = vcmp.eq.s32.totalorder %v684_v18, 1  ;;  %v254_v34 = vsel %vm892_vm13, %v697_v26, %v202_v32  ;;  %v370_v62 = vsel %vm903_vm5, %v752_v45, %v358_v59 }
  0x9c   :  { %v253_v36 = vsel %vm241_vm0, %v697_v26, %v201_v33  ;;  %v369_v52 = vsel %vm241_vm0, %v752_v45, %v357_v50 }
  0x9d   :  { %v688_v22 = vpop.permute.xlu1 %233 }
  0x9e   :  { %v690_v23 = vpop.permute.xlu0 %230  ;;  %vm246_vm13 = vcmp.eq.s32.totalorder %v688_v22, 1 }
  0x9f   :  { %vm893_vm7 = vcmp.eq.s32.totalorder %v690_v23, 1 }
  0xa0   :  { %v257_v44 = vsel %vm893_vm7, %v697_v26, %v205_v43 }
  0xa1   :  { %v282_v29 = vpop.permute.xlu1 %281 }
  0xa2   :  { %v279_v30 = vpop.permute.xlu0 %278  ;;  %vm302_vm2 = vcmp.eq.s32.totalorder %v282_v29, 1 }
  0xa3   :  { %vm301_vm3 = vcmp.eq.s32.totalorder %v279_v30, 1  ;;  %vm310_vm6 = vmand %vm703_vm15, %vm302_vm2 }
  0xa4   :  { %v318_v35 = vsel %vm310_vm6, %v254_v34, 0.0  ;;  %vm309_vm8 = vmand %vm708_vm1, %vm301_vm3  ;;  %vm78_vm6 = vcmp.eq.s32.totalorder %v686_v21, %v664_v4 }
  0xa5   :  { %v294_v38 = vpop.permute.xlu1 %293  ;;  %327 = vadd.xlane.f32.xlu1 %v318_v35  ;;  %v317_v40 = vsel %vm309_vm8, %v253_v36, 0.0  ;;  %vm190_vm8 = vcmp.eq.s32.totalorder %v672_v13, 1  ;;  %vm757_vm9 = vmand %vm78_vm6, %vm126_vm11 }
  0xa6   :  { %v291_v39 = vpop.permute.xlu0 %290  ;;  %325 = vadd.xlane.f32.xlu0 %v317_v40  ;;  %vm306_vm3 = vcmp.eq.s32.totalorder %v294_v38, 1  ;;  %v206_v51 = vsel %vm190_vm8, %v692_v24, %v694_v25  ;;  %v362_v3 = vsel %vm190_vm8, %v733_v37, %v741_v42 }
  0xa7   :  { %vm305_vm2 = vcmp.eq.s32.totalorder %v291_v39, 1  ;;  %vm314_vm7 = vmand %vm757_vm9, %vm306_vm3  ;;  %v258_v54 = vsel %vm246_vm13, %v697_v26, %v206_v51  ;;  %vm902_vm3 = vcmp.eq.s32.totalorder %v690_v23, 1  ;;  %v374_v4 = vsel %vm246_vm13, %v752_v45, %v362_v3 }
  0xa8   :  { %vm313_vm4 = vmand %vm737_vm14, %vm305_vm2  ;;  %v322_v57 = vsel %vm314_vm7, %v258_v54, 0.0  ;;  %v373_v60 = vsel %vm902_vm3, %v752_v45, %v361_v58 }
  0xa9   :  { %v321_v46 = vsel %vm313_vm4, %v257_v44, 0.0  ;;  %v398_v48 = vpop.permute.xlu1 %397 }
  0xaa   :  { %v395_v49 = vpop.permute.xlu0 %394  ;;  %333 = vadd.xlane.f32.xlu0 %v321_v46  ;;  %vm418_vm11 = vcmp.eq.s32.totalorder %v398_v48, 1 }
  0xab   :  { %vm417_vm2 = vcmp.eq.s32.totalorder %v395_v49, 1  ;;  %vm426_vm0 = vmand %vm703_vm15, %vm418_vm11 }
  0xac   :  { %vm425_vm4 = vmand %vm708_vm1, %vm417_vm2  ;;  %v434_v2 = vsel %vm426_vm0, %v370_v62, 0.0 }
  0xad   :  { %v433_v53 = vsel %vm425_vm4, %v369_v52, 0.0  ;;  %v410_v55 = vpop.permute.xlu1 %409 }
  0xae   :  { %v407_v56 = vpop.permute.xlu0 %406  ;;  %441 = vadd.xlane.f32.xlu1 %v433_v53  ;;  %335 = vadd.xlane.f32.xlu0 %v322_v57  ;;  %vm422_vm1 = vcmp.eq.s32.totalorder %v410_v55, 1 }
  0xaf   :  { %vm421_vm12 = vcmp.eq.s32.totalorder %v407_v56, 1  ;;  %vm430_vm10 = vmand %vm757_vm9, %vm422_vm1 }
  0xb0   :  { %vm429_vm7 = vmand %vm737_vm14, %vm421_vm12  ;;  %v438_v7 = vsel %vm430_vm10, %v374_v4, 0.0 }
  0xb1   :  { %v437_v61 = vsel %vm429_vm7, %v373_v60, 0.0  ;;  %v69_v63 = vpop.permute.xlu1 %68 }
  0xb2   :  { %v57_v1 = vpop.permute.xlu0 %56  ;;  %449 = vadd.xlane.f32.xlu1 %v437_v61  ;;  %443 = vadd.xlane.f32.xlu0 %v434_v2  ;;  %vm79_vm9 = vcmp.eq.s32.totalorder %v686_v21, %v69_v63 }
  0xb3   :  { %vm75_vm8 = vcmp.eq.s32.totalorder %v686_v21, %v57_v1 }
  0xb5   :  { %v117_v5 = vpop.permute.xlu1 %116 }
  0xb6   :  { %v105_v6 = vpop.permute.xlu0 %104  ;;  %451 = vadd.xlane.f32.xlu0 %v438_v7  ;;  %vm127_vm15 = vcmp.eq.s32.totalorder %v117_v5, 1 }
  0xb7   :  { %vm123_vm14 = vcmp.eq.s32.totalorder %v105_v6, 1  ;;  %vm809_vm4 = vmand %vm79_vm9, %vm127_vm15 }
  0xb8   :  { %vm813_vm12 = vmand %vm75_vm8, %vm123_vm14 }
  0xb9   :  { %v181_v8 = vpop.permute.xlu1 %180 }
  0xba   :  { %v169_v9 = vpop.permute.xlu0 %168  ;;  %vm191_vm2 = vcmp.eq.s32.totalorder %v181_v8, 1 }
  0xbb   :  { %vm187_vm6 = vcmp.eq.s32.totalorder %v169_v9, 1  ;;  %v207_v16 = vsel %vm191_vm2, %v692_v24, %v694_v25  ;;  %v363_v28 = vsel %vm191_vm2, %v733_v37, %v741_v42 }
  0xbc   :  { %v203_v15 = vsel %vm187_vm6, %v692_v24, %v694_v25  ;;  %v359_v27 = vsel %vm187_vm6, %v733_v37, %v741_v42 }
  0xbd   :  { %v237_v10 = vpop.permute.xlu1 %236 }
  0xbe   :  { %v225_v11 = vpop.permute.xlu0 %224  ;;  %vm247_vm13 = vcmp.eq.s32.totalorder %v237_v10, 1 }
  0xbf   :  { %vm243_vm11 = vcmp.eq.s32.totalorder %v225_v11, 1  ;;  %v259_v19 = vsel %vm247_vm13, %v697_v26, %v207_v16  ;;  %v375_v31 = vsel %vm247_vm13, %v752_v45, %v363_v28 }
  0xc0   :  { %v255_v17 = vsel %vm243_vm11, %v697_v26, %v203_v15  ;;  %v371_v29 = vsel %vm243_vm11, %v752_v45, %v359_v27 }
  0xc1   :  { %v297_v13 = vpop.permute.xlu1 %296 }
  0xc2   :  { %v285_v0 = vpop.permute.xlu0 %284  ;;  %vm307_vm0 = vcmp.eq.s32.totalorder %v297_v13, 1 }
  0xc3   :  { %vm303_vm1 = vcmp.eq.s32.totalorder %v285_v0, 1  ;;  %vm315_vm7 = vmand %vm809_vm4, %vm307_vm0 }
  0xc4   :  { %vm311_vm3 = vmand %vm813_vm12, %vm303_vm1  ;;  %v323_v23 = vsel %vm315_vm7, %v259_v19, 0.0 }
  0xc5   :  { %v319_v18 = vsel %vm311_vm3, %v255_v17, 0.0  ;;  %v413_v20 = vpop.permute.xlu1 %412  ;;  %337 = vadd.xlane.f32.xlu0 %v323_v23 }
  0xc6   :  { %v401_v22 = vpop.permute.xlu0 %400  ;;  %329 = vadd.xlane.f32.xlu1 %v319_v18  ;;  %vm423_vm5 = vcmp.eq.s32.totalorder %v413_v20, 1 }
  0xc7   :  { %vm419_vm10 = vcmp.eq.s32.totalorder %v401_v22, 1  ;;  %vm431_vm14 = vmand %vm809_vm4, %vm423_vm5 }
  0xc8   :  { %vm427_vm15 = vmand %vm813_vm12, %vm419_vm10  ;;  %v439_v34 = vsel %vm431_vm14, %v375_v31, 0.0 }
  0xc9   :  { %v435_v30 = vsel %vm427_vm15, %v371_v29, 0.0  ;;  %v72_v32 = vpop.permute.xlu1 %71  ;;  %453 = vadd.xlane.f32.xlu0 %v439_v34 }
  0xca   :  { %v60_v33 = vpop.permute.xlu0 %59  ;;  %445 = vadd.xlane.f32.xlu1 %v435_v30  ;;  %vm80_vm11 = vcmp.eq.s32.totalorder %v686_v21, %v72_v32 }
  0xcb   :  { %vm76_vm4 = vcmp.eq.s32.totalorder %v686_v21, %v60_v33 }
  0xcd   :  { %v120_v35 = vpop.permute.xlu1 %119 }
  0xce   :  { %v108_v36 = vpop.permute.xlu0 %107  ;;  %vm128_vm6 = vcmp.eq.s32.totalorder %v120_v35, 1 }
  0xcf   :  { %vm124_vm9 = vcmp.eq.s32.totalorder %v108_v36, 1  ;;  %vm847_vm12 = vmand %vm80_vm11, %vm128_vm6 }
  0xd0   :  { %vm851_vm1 = vmand %vm76_vm4, %vm124_vm9 }
  0xd1   :  { %v184_v38 = vpop.permute.xlu1 %183 }
  0xd2   :  { %v172_v39 = vpop.permute.xlu0 %171  ;;  %vm192_vm8 = vcmp.eq.s32.totalorder %v184_v38, 1 }
  0xd3   :  { %vm188_vm2 = vcmp.eq.s32.totalorder %v172_v39, 1  ;;  %v208_v21 = vsel %vm192_vm8, %v692_v24, %v694_v25 }
  0xd4   :  { %v204_v48 = vsel %vm188_vm2, %v692_v24, %v694_v25  ;;  %v360_v24 = vsel %vm188_vm2, %v733_v37, %v741_v42  ;;  %v364_v25 = vsel %vm192_vm8, %v733_v37, %v741_v42  ;;  %vm473_vm2 = vcmask 7168  }
  0xd5   :  { %v240_v40 = vpop.permute.xlu1 %239 }
  0xd6   :  { %v228_v41 = vpop.permute.xlu0 %227  ;;  %vm248_vm0 = vcmp.eq.s32.totalorder %v240_v40, 1 }
  0xd7   :  { %vm244_vm13 = vcmp.eq.s32.totalorder %v228_v41, 1  ;;  %v260_v51 = vsel %vm248_vm0, %v697_v26, %v208_v21  ;;  %v376_v56 = vsel %vm248_vm0, %v752_v45, %v364_v25 }
  0xd8   :  { %v256_v49 = vsel %vm244_vm13, %v697_v26, %v204_v48  ;;  %v372_v26 = vsel %vm244_vm13, %v752_v45, %v360_v24 }
  0xd9   :  { %v300_v44 = vpop.permute.xlu1 %299 }
  0xda   :  { %v288_v46 = vpop.permute.xlu0 %287  ;;  %vm308_vm3 = vcmp.eq.s32.totalorder %v300_v44, 1 }
  0xdb   :  { %vm304_vm7 = vcmp.eq.s32.totalorder %v288_v46, 1  ;;  %vm316_vm10 = vmand %vm847_vm12, %vm308_vm3 }
  0xdc   :  { %vm312_vm5 = vmand %vm851_vm1, %vm304_vm7  ;;  %v324_v54 = vsel %vm316_vm10, %v260_v51, 0.0 }
  0xdd   :  { %v320_v50 = vsel %vm312_vm5, %v256_v49, 0.0  ;;  %v416_v52 = vpop.permute.xlu1 %415  ;;  %339 = vadd.xlane.f32.xlu0 %v324_v54 }
  0xde   :  { %v404_v53 = vpop.permute.xlu0 %403  ;;  %331 = vadd.xlane.f32.xlu1 %v320_v50  ;;  %vm424_vm15 = vcmp.eq.s32.totalorder %v416_v52, 1 }
  0xdf   :  { %vm420_vm14 = vcmp.eq.s32.totalorder %v404_v53, 1  ;;  %vm432_vm9 = vmand %vm847_vm12, %vm424_vm15 }
  0xe0   :  { %vm428_vm6 = vmand %vm851_vm1, %vm420_vm14  ;;  %v440_v57 = vsel %vm432_vm9, %v376_v56, 0.0 }
  0xe1   :  { %v436_v55 = vsel %vm428_vm6, %v372_v26, 0.0  ;;  %455 = vadd.xlane.f32.xlu0 %v440_v57 }
  0xe2   :  { %447 = vadd.xlane.f32.xlu1 %v436_v55 }
 0x132   :  { %v328_v37 = vpop.xlane.xlu1 %327 }
 0x133   :  { %v326_v58 = vpop.xlane.xlu0 %325 }
 0x137   :  { %v334_v59 = vpop.xlane.xlu0 %333 }
 0x13b   :  { %v336_v60 = vpop.xlane.xlu0 %335  ;;  %v442_v42 = vpop.xlane.xlu1 %441 }
 0x13c   :  { %v457_v9 = vadd.f32 %v442_v42, %v326_v58 }
 0x13f   :  { %v444_v61 = vpop.xlane.xlu0 %443  ;;  %v450_v62 = vpop.xlane.xlu1 %449 }
 0x140   :  { %v461_v45 = vadd.f32 %v450_v62, %v334_v59  ;;  %v458_v6 = vadd.f32 %v444_v61, %v328_v37 }
 0x142   :  { %v465_v11 = vsub.f32 %v461_v45, %v457_v9 }
 0x143   :  { %v452_v63 = vpop.xlane.xlu0 %451 }
 0x144   :  { %v462_v5 = vadd.f32 %v452_v63, %v336_v60  ;;  %v469_v15 = vand.u32 2147483647, %v465_v11 }
 0x146   :  { %v466_v10 = vsub.f32 %v462_v5, %v458_v6  ;;  %v474_v23 = vsel %vm473_vm2, %v469_v15, 0.0 }
 0x148   :  { %v470_v14 = vand.u32 2147483647, %v466_v10 }
 0x14a   :  { %v475_v20 = vsel %vm473_vm2, %v470_v14, 0.0 }
 0x14b   :  { %v476_v29 = vadd.f32 %v475_v20, %v474_v23 }
 0x152   :  { %v338_v2 = vpop.xlane.xlu0 %337 }
 0x153   :  { %v330_v1 = vpop.xlane.xlu1 %329 }
 0x156   :  { %v454_v4 = vpop.xlane.xlu0 %453 }
 0x157   :  { %v446_v3 = vpop.xlane.xlu1 %445  ;;  %v463_v8 = vadd.f32 %v454_v4, %v338_v2 }
 0x158   :  { %v459_v7 = vadd.f32 %v446_v3, %v330_v1 }
 0x15a   :  { %v467_v12 = vsub.f32 %v463_v8, %v459_v7 }
 0x15c   :  { %v471_v16 = vand.u32 2147483647, %v467_v12 }
 0x15e   :  { %v477_v28 = vsel %vm473_vm2, %v471_v16, 0.0 }
 0x15f   :  { %v478_v31 = vadd.f32 %v477_v28, %v476_v29 }
 0x16a   :  { %v340_v0 = vpop.xlane.xlu0 %339 }
 0x16b   :  { %v332_v13 = vpop.xlane.xlu1 %331 }
 0x16e   :  { %v456_v19 = vpop.xlane.xlu0 %455 }
 0x16f   :  { %v448_v17 = vpop.xlane.xlu1 %447  ;;  %v464_v22 = vadd.f32 %v456_v19, %v340_v0 }
 0x170   :  { %v460_v18 = vadd.f32 %v448_v17, %v332_v13 }
 0x172   :  { %v468_v27 = vsub.f32 %v464_v22, %v460_v18 }
 0x174   :  { %v472_v30 = vand.u32 2147483647, %v468_v27 }
 0x176   :  { %v479_v32 = vsel %vm473_vm2, %v472_v30, 0.0 }
 0x177   :  { %v480_v33 = vadd.f32 %v479_v32, %v478_v31 }
 0x179   :  { %481 = vadd.xlane.f32.xlu1 %v480_v33 }
 0x206   :  { %v482_v34 = vpop.xlane.xlu1 %481 }
 0x207   :  { %v483_v35 = vrot.slane %v482_v34, 4 }
 0x209   :  { %v484_v36 = vadd.f32 %v483_v35, %v482_v34 }
 0x20b   :  { %v485_v38 = vrot.slane %v484_v36, 2 }
 0x20d   :  { %v486_v39 = vadd.f32 %v485_v38, %v484_v36 }
 0x20f   :  { %v487_v40 = vrot.slane %v486_v39, 1 }
 0x211   :  { %v488_v41 = vadd.f32 %v487_v40, %v486_v39 }
 0x213   :  { %496 = vpush %v488_v41 }
 0x244   :  { %s497_s0 = spop %496 }
 0x245   :  { %v490_v43 = vstv %s497_s0 }
 0x246   :  { %491 = vst [vmem:[%s891_s5] sm:$0xff] %v490_v43 }

</bundles_post_ra>
